<compile_context>
chip_gen: v6e
topology: v6e:2x2x1
jax: 0.10.0
libtpu: 0.0.40
codegen_flags: <defaults>
</compile_context>

<pallas_src>
import jax
import jax.numpy as jnp
from jax import lax
from jax.experimental import pallas as pl
from jax.experimental.pallas import tpu as pltpu


# ----------------------------- kernel --------------------------------------- #

def _mxu(a, b):
    """2-D matmul on the MXU: bf16 inputs, f32 accumulation."""
    return jnp.dot(a.astype(jnp.bfloat16), b.astype(jnp.bfloat16),
                   preferred_element_type=jnp.float32)


def _sigmoid(x):
    # 1 / (1 + exp(-x)); reciprocal goes to the otherwise-idle EUP slot.
    return pl.reciprocal(1.0 + jnp.exp(-x), approx=True)


def _io_vae_kernel(ops_ref, adj_ref, eps_ref,
                   w1_ref, b1_ref, w2_ref, b2_ref,
                   wmu_ref, bmu_ref, wlv_ref, blv_ref,
                   wd_ref, wops_ref, bops_ref,
                   out_ref):
    BN, D_in = ops_ref.shape           # batch collapsed into rows: BN = B*N
    B, N, _ = adj_ref.shape
    L = wmu_ref.shape[1]

    x = ops_ref[...]                   # [B*N, D_in]
    eps = eps_ref[...]                 # [B*N, L]
    adj_bf16 = adj_ref[...].astype(jnp.bfloat16)   # cast once for all GCN layers

    # Bias loads hoisted (read once per call).
    b1, b2 = b1_ref[...], b2_ref[...]
    bmu, blv, bops = bmu_ref[...], blv_ref[...], bops_ref[...]

    adj_dims = (((2,), (1,)), ((0,), (0,)))        # adj[b] @ s[b]

    def gcn(h, w_ref, bias, relu):
        s = _mxu(h, w_ref[...])                                   # [B*N, M]
        o = lax.dot_general(adj_bf16,
                            s.reshape(B, N, -1).astype(jnp.bfloat16),
                            adj_dims,
                            preferred_element_type=jnp.float32)   # [B, N, M]
        o = o.reshape(BN, -1) + bias
        return jnp.maximum(o, 0.0) if relu else o

    # ---- encoder ----
    h = gcn(x, w1_ref, b1, True)          # [B*N, H]
    h = gcn(h, w2_ref, b2, True)          # [B*N, H]
    mu = gcn(h, wmu_ref, bmu, False)      # [B*N, L]
    lv = gcn(h, wlv_ref, blv, False)      # [B*N, L]

    # ---- reparameterization (f32 elementwise) ----
    z = mu + jnp.exp(0.5 * lv) * eps

    # ---- decoder ----
    emb = _sigmoid(_mxu(z, wd_ref[...]))                          # [B*N, L]

    logits = _mxu(emb, wops_ref[...]) + bops                      # [B*N, D_in]
    m = jnp.max(logits, axis=-1, keepdims=True)
    e = jnp.exp(logits - m)
    ops_recon = e * pl.reciprocal(jnp.sum(e, axis=-1, keepdims=True), approx=True)

    # adj_recon[b] = sigmoid(emb[b] @ emb[b]^T): contract last axes directly
    # (no explicit XLU transpose).
    emb3 = emb.reshape(B, N, L).astype(jnp.bfloat16)
    adj_logits = lax.dot_general(emb3, emb3, (((2,), (2,)), ((0,), (0,))),
                                 preferred_element_type=jnp.float32)  # [B,N,N]
    adj_recon = _sigmoid(adj_logits.reshape(BN, N))

    # ---- single lane-dense output slab: [mu | logvar | z | ops_recon | adj_recon | 0-pad]
    pad = out_ref.shape[1] - (3 * L + D_in + N)
    pieces = [mu, lv, z, ops_recon, adj_recon]
    if pad > 0:
        pieces.append(jnp.zeros((BN, pad), jnp.float32))
    out_ref[...] = jnp.concatenate(pieces, axis=-1)


# ----------------------------- wrapper -------------------------------------- #

def init_params(key, d_in, hidden, latent):
    ks = jax.random.split(key, 6)

    def w(k, shape, scale=0.1):
        return (scale * jax.random.normal(k, shape)).astype(jnp.float32)

    zeros = lambda n: jnp.zeros((1, n), jnp.float32)
    return dict(
        w1=w(ks[0], (d_in, hidden)),   b1=zeros(hidden),
        w2=w(ks[1], (hidden, hidden)), b2=zeros(hidden),
        wmu=w(ks[2], (hidden, latent)), bmu=zeros(latent),
        wlv=w(ks[3], (hidden, latent)), blv=zeros(latent),
        wd=w(ks[4], (latent, latent)),
        wops=w(ks[5], (latent, d_in)), bops=zeros(d_in),
    )


def io_model_forward(params, ops, adj, inputs, eps):
    B, N, D_in = ops.shape
    L = params["wmu"].shape[1]

    tot = 3 * L + D_in + N                        # mu | logvar | z | ops | adj
    w_out = max(128, ((tot + 127) // 128) * 128)  # lane-dense, unmasked stores

    vmem = pl.BlockSpec(memory_space=pltpu.MemorySpace.VMEM)

    slab = pl.pallas_call(
        _io_vae_kernel,
        out_shape=jax.ShapeDtypeStruct((B * N, w_out), jnp.float32),
        in_specs=[vmem] * 14,
        out_specs=vmem,
    )(ops.reshape(B * N, D_in), adj, eps.reshape(B * N, L),
      params["w1"], params["b1"], params["w2"], params["b2"],
      params["wmu"], params["bmu"], params["wlv"], params["blv"],
      params["wd"], params["wops"], params["bops"])

    mu = slab[:, 0:L].reshape(B, N, L)
    logvar = slab[:, L:2 * L].reshape(B, N, L)
    z = slab[:, 2 * L:3 * L].reshape(B, N, L)
    ops_recon = slab[:, 3 * L:3 * L + D_in].reshape(B, N, D_in)
    adj_recon = slab[:, 3 * L + D_in:3 * L + D_in + N].reshape(B, N, N)

    # Base-class IOModel.inputs_forward(z, inputs) is an identity passthrough.
    # TODO(synk): subclasses override inputs_forward with a regressor head.
    outputs = inputs

    return ops_recon, adj_recon, mu, logvar, z, outputs


# ----------------------------- demo ----------------------------------------- #

if __name__ == "__main__":
    B, N, D_in, H, L = 2, 8, 8, 32, 16       # graph: 8 nodes, 8 op types
    C, HH, WW = 4, 16, 16                    # IO images, NCHW passthrough

    key = jax.random.PRNGKey(0)
    k_ops, k_adj, k_inp, k_eps, k_par = jax.random.split(key, 5)

    # one-hot-ish op encodings
    op_ids = jax.random.randint(k_ops, (B, N), 0, D_in)
    ops = jax.nn.one_hot(op_ids, D_in, dtype=jnp.float32)
    # upper-triangular DAG adjacency + self loops
    tri = jnp.triu(jnp.ones((N, N), jnp.float32), k=1)
    rnd = (jax.random.uniform(k_adj, (B, N, N)) > 0.5).astype(jnp.float32)
    adj = rnd * tri[None] + jnp.eye(N, dtype=jnp.float32)[None]

    inputs = jax.random.normal(k_inp, (B, C, HH, WW), dtype=jnp.float32)  # NCHW
    eps = jax.random.normal(k_eps, (B, N, L), dtype=jnp.float32)

    params = init_params(k_par, D_in, H, L)

    outs = jax.jit(io_model_forward)(params, ops, adj, inputs, eps)
    outs = jax.block_until_ready(outs)

    ops_recon, adj_recon, mu, logvar, z, outputs = outs
    assert ops_recon.shape == (B, N, D_in)
    assert adj_recon.shape == (B, N, N)
    assert mu.shape == (B, N, L) and logvar.shape == (B, N, L) and z.shape == (B, N, L)
    assert outputs.shape == (B, C, HH, WW)
    assert bool(jnp.all(jnp.isfinite(ops_recon))) and bool(jnp.all(jnp.isfinite(adj_recon)))
    assert bool(jnp.all(jnp.isfinite(z)))
    # softmax rows sum to ~1
    assert bool(jnp.all(jnp.abs(jnp.sum(ops_recon, axis=-1) - 1.0) < 1e-2))

    print("KERNEL_OK")
</pallas_src>

<mosaic_0001>
module attributes {stable_mosaic.version = 11 : i64} {
  func.func @_io_vae_kernel(%arg0: memref<16x8xf32, #tpu.memory_space<vmem>>, %arg1: memref<2x8x8xf32, #tpu.memory_space<vmem>>, %arg2: memref<16x16xf32, #tpu.memory_space<vmem>>, %arg3: memref<8x32xf32, #tpu.memory_space<vmem>>, %arg4: memref<1x32xf32, #tpu.memory_space<vmem>>, %arg5: memref<32x32xf32, #tpu.memory_space<vmem>>, %arg6: memref<1x32xf32, #tpu.memory_space<vmem>>, %arg7: memref<32x16xf32, #tpu.memory_space<vmem>>, %arg8: memref<1x16xf32, #tpu.memory_space<vmem>>, %arg9: memref<32x16xf32, #tpu.memory_space<vmem>>, %arg10: memref<1x16xf32, #tpu.memory_space<vmem>>, %arg11: memref<16x16xf32, #tpu.memory_space<vmem>>, %arg12: memref<16x8xf32, #tpu.memory_space<vmem>>, %arg13: memref<1x8xf32, #tpu.memory_space<vmem>>, %arg14: memref<16x128xf32, #tpu.memory_space<vmem>>) attributes {dimension_semantics = [], scalar_prefetch = 0 : i64, scratch_operands = 0 : i64, tpu.core_type = #tpu.core_type<tc>} {
    %c0 = arith.constant 0 : index
    %c0_0 = arith.constant 0 : index
    %0 = vector.load %arg0[%c0, %c0_0] : memref<16x8xf32, #tpu.memory_space<vmem>>, vector<16x8xf32>
    %c0_1 = arith.constant 0 : index
    %c0_2 = arith.constant 0 : index
    %1 = vector.load %arg2[%c0_1, %c0_2] : memref<16x16xf32, #tpu.memory_space<vmem>>, vector<16x16xf32>
    %c0_3 = arith.constant 0 : index
    %c0_4 = arith.constant 0 : index
    %c0_5 = arith.constant 0 : index
    %2 = vector.load %arg1[%c0_3, %c0_4, %c0_5] : memref<2x8x8xf32, #tpu.memory_space<vmem>>, vector<2x8x8xf32>
    %3 = arith.truncf %2 : vector<2x8x8xf32> to vector<2x8x8xbf16>
    %c0_6 = arith.constant 0 : index
    %c0_7 = arith.constant 0 : index
    %4 = vector.load %arg4[%c0_6, %c0_7] : memref<1x32xf32, #tpu.memory_space<vmem>>, vector<1x32xf32>
    %c0_8 = arith.constant 0 : index
    %c0_9 = arith.constant 0 : index
    %5 = vector.load %arg6[%c0_8, %c0_9] : memref<1x32xf32, #tpu.memory_space<vmem>>, vector<1x32xf32>
    %c0_10 = arith.constant 0 : index
    %c0_11 = arith.constant 0 : index
    %6 = vector.load %arg8[%c0_10, %c0_11] : memref<1x16xf32, #tpu.memory_space<vmem>>, vector<1x16xf32>
    %c0_12 = arith.constant 0 : index
    %c0_13 = arith.constant 0 : index
    %7 = vector.load %arg10[%c0_12, %c0_13] : memref<1x16xf32, #tpu.memory_space<vmem>>, vector<1x16xf32>
    %c0_14 = arith.constant 0 : index
    %c0_15 = arith.constant 0 : index
    %8 = vector.load %arg13[%c0_14, %c0_15] : memref<1x8xf32, #tpu.memory_space<vmem>>, vector<1x8xf32>
    %c0_16 = arith.constant 0 : index
    %c0_17 = arith.constant 0 : index
    %9 = vector.load %arg3[%c0_16, %c0_17] : memref<8x32xf32, #tpu.memory_space<vmem>>, vector<8x32xf32>
    %10 = arith.truncf %0 : vector<16x8xf32> to vector<16x8xbf16>
    %11 = arith.truncf %9 : vector<8x32xf32> to vector<8x32xbf16>
    %cst = arith.constant dense<0.000000e+00> : vector<16x32xf32>
    %12 = tpu.matmul %10, %11, %cst {dimension_numbers = #tpu.dot_dimension_numbers<[1], [0], [0], [1], [0, 0, 1, 1], [], []>} : vector<16x8xbf16>, vector<8x32xbf16>, vector<16x32xf32> -> vector<16x32xf32>
    %13 = vector.shape_cast %12 : vector<16x32xf32> to vector<2x8x32xf32>
    %14 = arith.truncf %13 : vector<2x8x32xf32> to vector<2x8x32xbf16>
    %cst_18 = arith.constant dense<0.000000e+00> : vector<2x8x32xf32>
    %15 = tpu.matmul %3, %14, %cst_18 {dimension_numbers = #tpu.dot_dimension_numbers<[2], [1], [1], [2], [0, 0, 0, 1, 1, 2], [0], [0]>} : vector<2x8x8xbf16>, vector<2x8x32xbf16>, vector<2x8x32xf32> -> vector<2x8x32xf32>
    %16 = vector.shape_cast %15 : vector<2x8x32xf32> to vector<16x32xf32>
    %17 = vector.broadcast %4 : vector<1x32xf32> to vector<16x32xf32>
    %18 = arith.addf %16, %17 : vector<16x32xf32>
    %cst_19 = arith.constant 0.000000e+00 : f32
    %19 = vector.broadcast %cst_19 : f32 to vector<16x32xf32>
    %20 = arith.maximumf %18, %19 : vector<16x32xf32>
    %c0_20 = arith.constant 0 : index
    %c0_21 = arith.constant 0 : index
    %21 = vector.load %arg5[%c0_20, %c0_21] : memref<32x32xf32, #tpu.memory_space<vmem>>, vector<32x32xf32>
    %22 = arith.truncf %20 : vector<16x32xf32> to vector<16x32xbf16>
    %23 = arith.truncf %21 : vector<32x32xf32> to vector<32x32xbf16>
    %cst_22 = arith.constant dense<0.000000e+00> : vector<16x32xf32>
    %24 = tpu.matmul %22, %23, %cst_22 {dimension_numbers = #tpu.dot_dimension_numbers<[1], [0], [0], [1], [0, 0, 1, 1], [], []>} : vector<16x32xbf16>, vector<32x32xbf16>, vector<16x32xf32> -> vector<16x32xf32>
    %25 = vector.shape_cast %24 : vector<16x32xf32> to vector<2x8x32xf32>
    %26 = arith.truncf %25 : vector<2x8x32xf32> to vector<2x8x32xbf16>
    %cst_23 = arith.constant dense<0.000000e+00> : vector<2x8x32xf32>
    %27 = tpu.matmul %3, %26, %cst_23 {dimension_numbers = #tpu.dot_dimension_numbers<[2], [1], [1], [2], [0, 0, 0, 1, 1, 2], [0], [0]>} : vector<2x8x8xbf16>, vector<2x8x32xbf16>, vector<2x8x32xf32> -> vector<2x8x32xf32>
    %28 = vector.shape_cast %27 : vector<2x8x32xf32> to vector<16x32xf32>
    %29 = vector.broadcast %5 : vector<1x32xf32> to vector<16x32xf32>
    %30 = arith.addf %28, %29 : vector<16x32xf32>
    %cst_24 = arith.constant 0.000000e+00 : f32
    %31 = vector.broadcast %cst_24 : f32 to vector<16x32xf32>
    %32 = arith.maximumf %30, %31 : vector<16x32xf32>
    %c0_25 = arith.constant 0 : index
    %c0_26 = arith.constant 0 : index
    %33 = vector.load %arg7[%c0_25, %c0_26] : memref<32x16xf32, #tpu.memory_space<vmem>>, vector<32x16xf32>
    %34 = arith.truncf %32 : vector<16x32xf32> to vector<16x32xbf16>
    %35 = arith.truncf %33 : vector<32x16xf32> to vector<32x16xbf16>
    %cst_27 = arith.constant dense<0.000000e+00> : vector<16x16xf32>
    %36 = tpu.matmul %34, %35, %cst_27 {dimension_numbers = #tpu.dot_dimension_numbers<[1], [0], [0], [1], [0, 0, 1, 1], [], []>} : vector<16x32xbf16>, vector<32x16xbf16>, vector<16x16xf32> -> vector<16x16xf32>
    %37 = vector.shape_cast %36 : vector<16x16xf32> to vector<2x8x16xf32>
    %38 = arith.truncf %37 : vector<2x8x16xf32> to vector<2x8x16xbf16>
    %cst_28 = arith.constant dense<0.000000e+00> : vector<2x8x16xf32>
    %39 = tpu.matmul %3, %38, %cst_28 {dimension_numbers = #tpu.dot_dimension_numbers<[2], [1], [1], [2], [0, 0, 0, 1, 1, 2], [0], [0]>} : vector<2x8x8xbf16>, vector<2x8x16xbf16>, vector<2x8x16xf32> -> vector<2x8x16xf32>
    %40 = vector.shape_cast %39 : vector<2x8x16xf32> to vector<16x16xf32>
    %41 = vector.broadcast %6 : vector<1x16xf32> to vector<16x16xf32>
    %42 = arith.addf %40, %41 : vector<16x16xf32>
    %c0_29 = arith.constant 0 : index
    %c0_30 = arith.constant 0 : index
    %43 = vector.load %arg9[%c0_29, %c0_30] : memref<32x16xf32, #tpu.memory_space<vmem>>, vector<32x16xf32>
    %44 = arith.truncf %32 : vector<16x32xf32> to vector<16x32xbf16>
    %45 = arith.truncf %43 : vector<32x16xf32> to vector<32x16xbf16>
    %cst_31 = arith.constant dense<0.000000e+00> : vector<16x16xf32>
    %46 = tpu.matmul %44, %45, %cst_31 {dimension_numbers = #tpu.dot_dimension_numbers<[1], [0], [0], [1], [0, 0, 1, 1], [], []>} : vector<16x32xbf16>, vector<32x16xbf16>, vector<16x16xf32> -> vector<16x16xf32>
    %47 = vector.shape_cast %46 : vector<16x16xf32> to vector<2x8x16xf32>
    %48 = arith.truncf %47 : vector<2x8x16xf32> to vector<2x8x16xbf16>
    %cst_32 = arith.constant dense<0.000000e+00> : vector<2x8x16xf32>
    %49 = tpu.matmul %3, %48, %cst_32 {dimension_numbers = #tpu.dot_dimension_numbers<[2], [1], [1], [2], [0, 0, 0, 1, 1, 2], [0], [0]>} : vector<2x8x8xbf16>, vector<2x8x16xbf16>, vector<2x8x16xf32> -> vector<2x8x16xf32>
    %50 = vector.shape_cast %49 : vector<2x8x16xf32> to vector<16x16xf32>
    %51 = vector.broadcast %7 : vector<1x16xf32> to vector<16x16xf32>
    %52 = arith.addf %50, %51 : vector<16x16xf32>
    %cst_33 = arith.constant 5.000000e-01 : f32
    %53 = vector.broadcast %cst_33 : f32 to vector<16x16xf32>
    %54 = arith.mulf %53, %52 : vector<16x16xf32>
    %55 = math.exp %54 : vector<16x16xf32>
    %56 = arith.mulf %55, %1 : vector<16x16xf32>
    %57 = arith.addf %42, %56 : vector<16x16xf32>
    %c0_34 = arith.constant 0 : index
    %c0_35 = arith.constant 0 : index
    %58 = vector.load %arg11[%c0_34, %c0_35] : memref<16x16xf32, #tpu.memory_space<vmem>>, vector<16x16xf32>
    %59 = arith.truncf %57 : vector<16x16xf32> to vector<16x16xbf16>
    %60 = arith.truncf %58 : vector<16x16xf32> to vector<16x16xbf16>
    %cst_36 = arith.constant dense<0.000000e+00> : vector<16x16xf32>
    %61 = tpu.matmul %59, %60, %cst_36 {dimension_numbers = #tpu.dot_dimension_numbers<[1], [0], [0], [1], [0, 0, 1, 1], [], []>} : vector<16x16xbf16>, vector<16x16xbf16>, vector<16x16xf32> -> vector<16x16xf32>
    %cst_37 = arith.constant 0.000000e+00 : f32
    %62 = vector.broadcast %cst_37 : f32 to vector<16x16xf32>
    %63 = arith.subf %62, %61 : vector<16x16xf32>
    %64 = math.exp %63 : vector<16x16xf32>
    %cst_38 = arith.constant 1.000000e+00 : f32
    %65 = vector.broadcast %cst_38 : f32 to vector<16x16xf32>
    %66 = arith.addf %65, %64 : vector<16x16xf32>
    %67 = tpu.reciprocal %66 {approx = true} : vector<16x16xf32> -> vector<16x16xf32>
    %c0_39 = arith.constant 0 : index
    %c0_40 = arith.constant 0 : index
    %68 = vector.load %arg12[%c0_39, %c0_40] : memref<16x8xf32, #tpu.memory_space<vmem>>, vector<16x8xf32>
    %69 = arith.truncf %67 : vector<16x16xf32> to vector<16x16xbf16>
    %70 = arith.truncf %68 : vector<16x8xf32> to vector<16x8xbf16>
    %cst_41 = arith.constant dense<0.000000e+00> : vector<16x8xf32>
    %71 = tpu.matmul %69, %70, %cst_41 {dimension_numbers = #tpu.dot_dimension_numbers<[1], [0], [0], [1], [0, 0, 1, 1], [], []>} : vector<16x16xbf16>, vector<16x8xbf16>, vector<16x8xf32> -> vector<16x8xf32>
    %72 = vector.broadcast %8 : vector<1x8xf32> to vector<16x8xf32>
    %73 = arith.addf %71, %72 : vector<16x8xf32>
    %cst_42 = arith.constant dense<0xFF800000> : vector<16xf32>
    %74 = vector.multi_reduction <maximumf>, %73, %cst_42 [1] : vector<16x8xf32> to vector<16xf32>
    %75 = vector.shape_cast %74 : vector<16xf32> to vector<16x1xf32>
    %76 = vector.broadcast %75 : vector<16x1xf32> to vector<16x8xf32>
    %77 = arith.subf %73, %76 : vector<16x8xf32>
    %78 = math.exp %77 : vector<16x8xf32>
    %cst_43 = arith.constant dense<0.000000e+00> : vector<16xf32>
    %79 = vector.multi_reduction <add>, %78, %cst_43 [1] : vector<16x8xf32> to vector<16xf32>
    %80 = vector.shape_cast %79 : vector<16xf32> to vector<16x1xf32>
    %81 = tpu.reciprocal %80 {approx = true} : vector<16x1xf32> -> vector<16x1xf32>
    %82 = vector.broadcast %81 : vector<16x1xf32> to vector<16x8xf32>
    %83 = arith.mulf %78, %82 : vector<16x8xf32>
    %84 = vector.shape_cast %67 : vector<16x16xf32> to vector<2x8x16xf32>
    %85 = arith.truncf %84 : vector<2x8x16xf32> to vector<2x8x16xbf16>
    %cst_44 = arith.constant dense<0.000000e+00> : vector<2x8x8xf32>
    %86 = tpu.matmul %85, %85, %cst_44 {dimension_numbers = #tpu.dot_dimension_numbers<[2], [2], [1], [1], [0, 0, 0, 1, 1, 1], [0], [0]>} : vector<2x8x16xbf16>, vector<2x8x16xbf16>, vector<2x8x8xf32> -> vector<2x8x8xf32>
    %87 = vector.shape_cast %86 : vector<2x8x8xf32> to vector<16x8xf32>
    %cst_45 = arith.constant 0.000000e+00 : f32
    %88 = vector.broadcast %cst_45 : f32 to vector<16x8xf32>
    %89 = arith.subf %88, %87 : vector<16x8xf32>
    %90 = math.exp %89 : vector<16x8xf32>
    %cst_46 = arith.constant 1.000000e+00 : f32
    %91 = vector.broadcast %cst_46 : f32 to vector<16x8xf32>
    %92 = arith.addf %91, %90 : vector<16x8xf32>
    %93 = tpu.reciprocal %92 {approx = true} : vector<16x8xf32> -> vector<16x8xf32>
    %cst_47 = arith.constant 0.000000e+00 : f32
    %94 = vector.broadcast %cst_47 : f32 to vector<16x64xf32>
    %95 = tpu.concatenate %42, %52, %57, %83, %93, %94 in 1 : vector<16x16xf32>, vector<16x16xf32>, vector<16x16xf32>, vector<16x8xf32>, vector<16x8xf32>, vector<16x64xf32> -> vector<16x128xf32>
    %c0_48 = arith.constant 0 : index
    %c0_49 = arith.constant 0 : index
    %96 = vector.load %arg14[%c0_48, %c0_49] : memref<16x128xf32, #tpu.memory_space<vmem>>, vector<16x128xf32>
    tpu.vector_store %arg14[%c0_48, %c0_49], %95 {strides = array<i32>} : memref<16x128xf32, #tpu.memory_space<vmem>>, vector<16x128xf32>,
    return
  }
}

</mosaic_0001>

<bundles_post_ra>
// kernel: io_model_forward.1
= control target key start
LH: loop header
LB: loop body
LE: loop exit
PB: predicated region body
PF: predicated region fallthrough
CT: control target
= control target key end

     0   :  { %19 = vsyncpa [#allocation3], 0  ;;  %s1650_s0 = inlined_call_operand.vmem [shape: f32[16,8], index: 0, kind: input, shape index: {}]   ;;  %s1651_s1 = inlined_call_operand.vmem [shape: f32[2,8,8], index: 1, kind: input, shape index: {}]   ;;  %s1652_s2 = inlined_call_operand.vmem [shape: f32[16,16], index: 2, kind: input, shape index: {}]   ;;  %s1653_s3 = inlined_call_operand.hbm [shape: f32[8,32], index: 3, kind: input, shape index: {}]   ;;  %s1654_s4 = inlined_call_operand.hbm [shape: f32[1,32], index: 4, kind: input, shape index: {}]   ;;  %s1655_s5 = inlined_call_operand.vmem [shape: f32[32,32], index: 5, kind: input, shape index: {}]   ;;  %s1656_s6 = inlined_call_operand.hbm [shape: f32[1,32], index: 6, kind: input, shape index: {}]   ;;  %s1657_s7 = inlined_call_operand.vmem [shape: f32[32,16], index: 7, kind: input, shape index: {}]   ;;  %s1658_s8 = inlined_call_operand.hbm [shape: f32[1,16], index: 8, kind: input, shape index: {}]   ;;  %s1659_s9 = inlined_call_operand.vmem [shape: f32[32,16], index: 9, kind: input, shape index: {}]   ;;  %s1660_s10 = inlined_call_operand.hbm [shape: f32[1,16], index: 10, kind: input, shape index: {}]   ;;  %s1661_s11 = inlined_call_operand.vmem [shape: f32[16,16], index: 11, kind: input, shape index: {}]   ;;  %s1662_s12 = inlined_call_operand.vmem [shape: f32[16,8], index: 12, kind: input, shape index: {}]   ;;  %s1663_s13 = inlined_call_operand.hbm [shape: f32[1,8], index: 13, kind: input, shape index: {}]   ;;  %s1664_s14 = inlined_call_operand.vmem [shape: f32[16,128], index: 14, kind: output, shape index: {}]  }
   0x1   :  { %20 = vsyncpa [#allocation5], 0 }
   0x2   :  { %21 = vsyncpa [#allocation8], 0 }
   0x3   :  { %22 = vsyncpa [#allocation11], 0  ;;  %s1351_s29 = smov [#allocation4]   ;;  %s1352_s15 = smov [#allocation7]  }
   0x4   :  { %s45_s30 = sshll.u32 %s1351_s29, 4  ;;  %s69_s16 = sshll.u32 %s1352_s15, 4  ;;  %s46_s30 = int_to_ptr.vmem [resolvable:$true] %s45_s30  ;;  %s70_s16 = int_to_ptr.vmem [resolvable:$true] %s69_s16 }
   0x5   :  { %s1231_s17 = scalar_lea.vmem %s46_s30, 16  ;;  %s1235_s18 = scalar_lea.vmem %s46_s30, 32 }
   0x6   :  { %p1232_p0 = scmp.ne.s32.totalorder %s46_s30, %s1231_s17  ;;  %p1236_p1 = scmp.lt.s32.totalorder %s46_s30, %s46_s30 }
   0x7   :  { %p1237_p2 = scmp.lt.s32.totalorder %s1235_s18, %s1231_s17 }
   0x9   :  { %p1238_p3 = por %p1237_p2, %p1236_p1 }
   0xb   :  { %p1239_p4 = pnand %p1238_p3, %p1232_p0 }
   0xd   :  { %1242 = shalt.err (!%p1239_p4)
}
   0xe   :  { %48 = dma.hbm_to_vmem [thread:$0]  %s1654_s4, 16, %s46_s30, [#allocation5]  }
   0xf   :  { %s1251_s21 = scalar_lea.vmem %s70_s16, 16  ;;  %s1255_s22 = scalar_lea.vmem %s70_s16, 32 }
  0x10   :  { %p1252_p5 = scmp.ne.s32.totalorder %s70_s16, %s1251_s21  ;;  %p1256_p6 = scmp.lt.s32.totalorder %s70_s16, %s70_s16 }
  0x11   :  { %p1257_p7 = scmp.lt.s32.totalorder %s1255_s22, %s1251_s21 }
  0x13   :  { %p1258_p8 = por %p1257_p7, %p1256_p6 }
  0x15   :  { %p1259_p9 = pnand %p1258_p8, %p1252_p5 }
  0x17   :  { %1262 = shalt.err (!%p1259_p9)
}
  0x18   :  { %72 = dma.hbm_to_vmem [thread:$0]  %s1658_s8, 16, %s70_s16, [#allocation8]  }
  0x19   :  { %s1353_s25 = smov [#allocation2]   ;;  %s1354_s27 = smov [#allocation6]  }
  0x1a   :  { %s35_s26 = sshll.u32 %s1353_s25, 4  ;;  %s57_s28 = sshll.u32 %s1354_s27, 4  ;;  %s36_s26 = int_to_ptr.vmem [resolvable:$true] %s35_s26  ;;  %s58_s28 = int_to_ptr.vmem [resolvable:$true] %s57_s28 }
  0x1b   :  { %s1271_s29 = scalar_lea.vmem %s36_s26, 128  ;;  %p1276_p11 = scmp.lt.s32.totalorder %s36_s26, %s36_s26 }
  0x1c   :  { %p1272_p10 = scmp.ne.s32.totalorder %s36_s26, %s1271_s29  ;;  %p1277_p12 = scmp.lt.s32.totalorder %s1271_s29, %s1271_s29 }
  0x1e   :  { %p1278_p13 = por %p1277_p12, %p1276_p11 }
  0x20   :  { %p1279_p0 = pnand %p1278_p13, %p1272_p10 }
  0x22   :  { %1282 = shalt.err (!%p1279_p0)
}
  0x23   :  { %38 = dma.hbm_to_vmem [thread:$0]  %s1653_s3, 128, %s36_s26, [#allocation3]  }
  0x24   :  { %s1291_s15 = scalar_lea.vmem %s58_s28, 16  ;;  %s1295_s8 = scalar_lea.vmem %s58_s28, 32 }
  0x25   :  { %p1292_p1 = scmp.ne.s32.totalorder %s58_s28, %s1291_s15  ;;  %p1296_p2 = scmp.lt.s32.totalorder %s58_s28, %s58_s28 }
  0x26   :  { %p1297_p3 = scmp.lt.s32.totalorder %s1295_s8, %s1291_s15 }
  0x28   :  { %p1298_p4 = por %p1297_p3, %p1296_p2 }
  0x2a   :  { %p1299_p5 = pnand %p1298_p4, %p1292_p1 }
  0x2c   :  { %1302 = shalt.err (!%p1299_p5)
}
  0x2d   :  { %60 = dma.hbm_to_vmem [thread:$0]  %s1656_s6, 16, %s58_s28, [#allocation5]  }
  0x2e   :  { %s1355_s18 = smov [#allocation9]   ;;  %s1356_s20 = smov [#allocation10]  }
  0x2f   :  { %s81_s19 = sshll.u32 %s1355_s18, 4  ;;  %s95_s21 = sshll.u32 %s1356_s20, 4  ;;  %s82_s19 = int_to_ptr.vmem [resolvable:$true] %s81_s19  ;;  %s96_s21 = int_to_ptr.vmem [resolvable:$true] %s95_s21 }
  0x30   :  { %s1311_s22 = scalar_lea.vmem %s82_s19, 16  ;;  %s1315_s3 = scalar_lea.vmem %s82_s19, 32 }
  0x31   :  { %p1312_p6 = scmp.ne.s32.totalorder %s82_s19, %s1311_s22  ;;  %p1316_p7 = scmp.lt.s32.totalorder %s82_s19, %s82_s19 }
  0x32   :  { %p1317_p8 = scmp.lt.s32.totalorder %s1315_s3, %s1311_s22 }
  0x34   :  { %p1318_p9 = por %p1317_p8, %p1316_p7 }
  0x36   :  { %p1319_p10 = pnand %p1318_p9, %p1312_p6 }
  0x38   :  { %1322 = shalt.err (!%p1319_p10)
}
  0x39   :  { %84 = dma.hbm_to_vmem [thread:$0]  %s1660_s10, 16, %s82_s19, [#allocation8]  }
  0x3a   :  { %s1331_s25 = scalar_lea.vmem %s96_s21, 16  ;;  %s1335_s6 = scalar_lea.vmem %s96_s21, 32 }
  0x3b   :  { %p1332_p11 = scmp.ne.s32.totalorder %s96_s21, %s1331_s25  ;;  %p1336_p12 = scmp.lt.s32.totalorder %s96_s21, %s96_s21 }
  0x3c   :  { %p1337_p13 = scmp.lt.s32.totalorder %s1335_s6, %s1331_s25 }
  0x3e   :  { %p1338_p0 = por %p1337_p13, %p1336_p12 }
  0x40   :  { %p1339_p1 = pnand %p1338_p0, %p1332_p11 }
  0x42   :  { %1342 = shalt.err (!%p1339_p1)
}
  0x43   :  { %98 = dma.hbm_to_vmem [thread:$0]  %s1663_s13, 16, %s96_s21, [#allocation11]  }
  0x44   :  { %1343 = dma.done.wait [#allocation3], 128  }
  0x45   :  { %1344 = vsyncadd [#allocation3], 4294967168 }
  0x46   :  { %1345 = dma.done.wait [#allocation5], 32  }
  0x47   :  { %1346 = vsyncadd [#allocation5], 4294967264 }
  0x48   :  { %1347 = dma.done.wait [#allocation8], 32  }
  0x49   :  { %1348 = vsyncadd [#allocation8], 4294967264 }
  0x4a   :  { %1349 = dma.done.wait [#allocation11], 16  }
  0x4b   :  { %1350 = vsyncadd [#allocation11], 4294967280  ;;  %v1357_v0 = vmov 0.0   ;;  %vm1358_vm0 = vmmov 0   ;;  %v131_v1 = vld [vmem:[#allocation2] sm:$0xff]  ;;  %vm138_vm1 = vcmask 1043456  }
  0x4c   :  { %1081 = vmatprep.subr.bf16.mxu0 %v1357_v0  ;;  %1083 = vmatprep.mubr.msk.bf16.mxu0 %vm1358_vm0, %v1357_v0  ;;  %v118_v2 = vld [vmem:[%s1650_s0] sm:$0xff]  ;;  %v119_v3 = vld [vmem:[%s1650_s0 + $0x8] sm:$0xff]  ;;  %v133_v4 = vpack.c.bf16 %v131_v1, %v131_v1  ;;  %vm134_vm2 = vcmask 64512   ;;  %v289_v19 = vld [vmem:[%s1655_s5 + $0x10] sm:$0xff]  ;;  %vm294_vm3 = vcmask 261120   ;;  %vm741_vm4 = vcmask 130048  }
  0x4d   :  { %1087 = vmatprep.subr.bf16.mxu1 %v1357_v0  ;;  %1089 = vmatprep.mubr.msk.bf16.mxu1 %vm1358_vm0, %v1357_v0  ;;  %v132_v6 = vpack.c.bf16 %v119_v3, %v118_v2  ;;  %v122_v8 = vld [vmem:[%s1651_s1] sm:$0xff]  ;;  %v123_v14 = vld [vmem:[%s1651_s1 + $0x8] sm:$0xff]  ;;  %v290_v20 = vld [vmem:[%s1655_s5 + $0x18] sm:$0xff]  ;;  %s1360_s21 = smov 32   ;;  %s1362_s22 = smov 56   ;;  %vm1006_vm5 = vcmask 392192  }
  0x4e   :  { %v140_v5 = vsel %vm138_vm1, %v133_v4, 0  ;;  %v1477_v12 = vpack.c.bf16 %v122_v8, %v122_v8  ;;  %v1486_v18 = vpack.c.bf16 %v123_v14, %v123_v14  ;;  %v293_v21 = vpack.c.bf16 %v290_v20, %v289_v19  ;;  %v287_v22 = vld [vmem:[%s1655_s5] sm:$0xff]  ;;  %v288_v23 = vld [vmem:[%s1655_s5 + $0x8] sm:$0xff]  ;;  %v439_v47 = vld [vmem:[%s1657_s7 + $0x10] sm:$0xff]  ;;  %s1361_s5 = smov 48  }
  0x4f   :  { %1082 = vmatpush3.bf16.msra.mxu0 %v140_v5  ;;  %v292_v24 = vpack.c.bf16 %v288_v23, %v287_v22  ;;  %v1028_v25 = vld [vmem:[#allocation4] ss:$0 sm:$0xff]  ;;  %v440_v48 = vld [vmem:[%s1657_s7 + $0x18] sm:$0xff]  ;;  %v437_v50 = vld [vmem:[%s1657_s7] sm:$0xff]  ;;  %vm1009_vm6 = vcmask 457728   ;;  %vm1012_vm7 = vcmask 523264  }
  0x50   :  { %1093 = vmatprep.subr.bf16.mxu0 %v1357_v0  ;;  %v443_v49 = vpack.c.bf16 %v440_v48, %v439_v47  ;;  %v438_v51 = vld [vmem:[%s1657_s7 + $0x8] sm:$0xff]  ;;  %v584_v14 = vld [vmem:[%s1659_s9] sm:$0xff] }
  0x51   :  { %v442_v52 = vpack.c.bf16 %v438_v51, %v437_v50  ;;  %v1032_v53 = vld [vmem:[#allocation6] ss:$0 sm:$0xff] }
  0x52   :  { %1084 = vmatmul.mubr.msk.bf16.vlgmr.msra.gmra.mxu0 %vm134_vm2, %v132_v6  ;;  %v586_v6 = vld [vmem:[%s1659_s9 + $0x10] sm:$0xff] }
  0x53   :  { %1095 = vmatprep.mubr.msk.bf16.mxu0 %vm1358_vm0, %v1357_v0 }
 0x112   :  { %v176_v7 = vpop.f32.mrf.mxu0 }
 0x113   :  { %v183_v9 = vpack.c.bf16 %v176_v7, %v176_v7  ;;  %v587_v7 = vld [vmem:[%s1659_s9 + $0x18] sm:$0xff] }
 0x114   :  { %v1085_v10 = vpop.f32.mrf.mxu0 }
 0x115   :  { %v189_v11 = vsel %vm138_vm1, %v183_v9, 0 }
 0x116   :  { %v179_v13 = vpop.f32.mrf.mxu0  ;;  %1088 = vmatpush3.bf16.msra.mxu1 %v189_v11  ;;  %v589_v11 = vpack.c.bf16 %v587_v7, %v586_v6 }
 0x117   :  { %v184_v15 = vpack.c.bf16 %v179_v13, %v179_v13  ;;  %1099 = vmatprep.subr.bf16.mxu1 %v1357_v0 }
 0x118   :  { %v1086_v16 = vpop.f32.mrf.mxu0 }
 0x119   :  { %v235_v17 = vsel %vm138_vm1, %v184_v15, 0  ;;  %1090 = vmatmul.mubr.msk.bf16.vlgmr.msra.gmra.mxu1 %vm134_vm2, %v1477_v12  ;;  %v585_v15 = vld [vmem:[%s1659_s9 + $0x8] sm:$0xff] }
 0x11a   :  { %1094 = vmatpush3.bf16.msra.mxu0 %v235_v17  ;;  %1103 = vmatprep.mubr.msk.bf16.mxu1 %vm1358_vm0, %v1357_v0  ;;  %v588_v19 = vpack.c.bf16 %v585_v15, %v584_v14 }
 0x11b   :  { %1107 = vmatprep.subr.bf16.mxu0 %v1357_v0  ;;  %1100 = vmatpush3.bf16.msra.mxu1 %v293_v21 }
 0x11c   :  { %1101 = vmatprep.subr.bf16.mxu1 %v1357_v0 }
 0x11d   :  { %1096 = vmatmul.mubr.msk.bf16.vlgmr.msra.gmra.mxu0 %vm134_vm2, %v1486_v18 }
 0x11e   :  { %1109 = vmatprep.mubr.msk.bf16.mxu0 %vm1358_vm0, %v1357_v0 }
 0x11f   :  { %1102 = vmatpush3.bf16.msra.mxu1 %v292_v24 }
 0x120   :  { %1113 = vmatprep.subr.bf16.mxu1 %v1357_v0 }
 0x1d9   :  { %v225_v26 = vpop.f32.mrf.mxu1 }
 0x1da   :  { %v283_v27 = vadd.f32 %v1028_v25, %v225_v26 }
 0x1db   :  { %v1091_v28 = vpop.f32.mrf.mxu1 }
 0x1dc   :  { %v285_v31 = vmax.f32 %v283_v27, 0.0 }
 0x1dd   :  { %v228_v29 = vpop.f32.mrf.mxu1  ;;  %v271_v30 = vpop.f32.mrf.mxu0 }
 0x1de   :  { %v284_v32 = vadd.f32 %v1028_v25, %v271_v30 }
 0x1df   :  { %v1092_v33 = vpop.f32.mrf.mxu1  ;;  %v1097_v34 = vpop.f32.mrf.mxu0 }
 0x1e0   :  { %v286_v35 = vmax.f32 %v284_v32, 0.0 }
 0x1e1   :  { %v274_v36 = vpop.f32.mrf.mxu0 }
 0x1e2   :  { %v291_v37 = vpack.c.bf16 %v286_v35, %v285_v31  ;;  %v737_v36 = vld [vmem:[%s1661_s11] sm:$0xff] }
 0x1e3   :  { %v1098_v38 = vpop.f32.mrf.mxu0 }
 0x1e4   :  { %1104 = vmatmul.mubr.msk.bf16.vlgmr.msra.gmra.mxu1 %vm294_vm3, %v291_v37  ;;  %v1040_v38 = vld [vmem:[#allocation9] ss:$0 sm:$0xff] }
 0x1e5   :  { %1115 = vmatprep.mubr.msk.bf16.mxu1 %vm1358_vm0, %v1357_v0 }
 0x2a4   :  { %v332_v39 = vpop.f32.mrf.mxu1 }
 0x2a5   :  { %v339_v40 = vpack.c.bf16 %v332_v39, %v332_v39 }
 0x2a6   :  { %v1105_v41 = vpop.f32.mrf.mxu1 }
 0x2a7   :  { %v342_v42 = vsel %vm138_vm1, %v339_v40, 0 }
 0x2a8   :  { %v335_v43 = vpop.f32.mrf.mxu1  ;;  %1108 = vmatpush3.bf16.msra.mxu0 %v342_v42 }
 0x2a9   :  { %v340_v44 = vpack.c.bf16 %v335_v43, %v335_v43  ;;  %1119 = vmatprep.subr.bf16.mxu0 %v1357_v0 }
 0x2aa   :  { %v1106_v45 = vpop.f32.mrf.mxu1 }
 0x2ab   :  { %v385_v46 = vsel %vm138_vm1, %v340_v44, 0  ;;  %1110 = vmatmul.mubr.msk.bf16.vlgmr.msra.gmra.mxu0 %vm134_vm2, %v1477_v12 }
 0x2ac   :  { %1114 = vmatpush3.bf16.msra.mxu1 %v385_v46  ;;  %1123 = vmatprep.mubr.msk.bf16.mxu0 %vm1358_vm0, %v1357_v0 }
 0x2ad   :  { %1127 = vmatprep.subr.bf16.mxu1 %v1357_v0  ;;  %1120 = vmatpush3.bf16.msra.mxu0 %v443_v49 }
 0x2ae   :  { %1121 = vmatprep.subr.bf16.mxu0 %v1357_v0 }
 0x2af   :  { %1116 = vmatmul.mubr.msk.bf16.vlgmr.msra.gmra.mxu1 %vm134_vm2, %v1486_v18 }
 0x2b0   :  { %1129 = vmatprep.mubr.msk.bf16.mxu1 %vm1358_vm0, %v1357_v0 }
 0x2b1   :  { %1122 = vmatpush3.bf16.msra.mxu0 %v442_v52 }
 0x2b2   :  { %1133 = vmatprep.subr.bf16.mxu0 %v1357_v0 }
 0x36b   :  { %v378_v54 = vpop.f32.mrf.mxu0 }
 0x36c   :  { %v433_v55 = vadd.f32 %v1032_v53, %v378_v54  ;;  %v1036_v54 = vld [vmem:[#allocation7] ss:$0 sm:$0xff] }
 0x36d   :  { %v1111_v56 = vpop.f32.mrf.mxu0 }
 0x36e   :  { %v435_v59 = vmax.f32 %v433_v55, 0.0  ;;  %v121_v55 = vld [vmem:[%s1652_s2 + $0x8] sm:$0xff] }
 0x36f   :  { %v381_v57 = vpop.f32.mrf.mxu0  ;;  %v421_v58 = vpop.f32.mrf.mxu1 }
 0x370   :  { %v434_v60 = vadd.f32 %v1032_v53, %v421_v58  ;;  %v120_v53 = vld [vmem:[%s1652_s2] sm:$0xff] }
 0x371   :  { %v1112_v61 = vpop.f32.mrf.mxu0  ;;  %v1117_v62 = vpop.f32.mrf.mxu1 }
 0x372   :  { %v436_v63 = vmax.f32 %v434_v60, 0.0 }
 0x373   :  { %v424_v1 = vpop.f32.mrf.mxu1 }
 0x374   :  { %v441_v2 = vpack.c.bf16 %v436_v63, %v435_v59  ;;  %v796_v1 = vld [vmem:[%s1662_s12] sm:$0xff] }
 0x375   :  { %v1118_v3 = vpop.f32.mrf.mxu1 }
 0x376   :  { %1124 = vmatmul.mubr.msk.bf16.vlgmr.msra.gmra.mxu0 %vm294_vm3, %v441_v2 }
 0x377   :  { %1135 = vmatprep.mubr.msk.bf16.mxu0 %vm1358_vm0, %v1357_v0 }
 0x436   :  { %v481_v4 = vpop.f32.mrf.mxu0 }
 0x437   :  { %v488_v5 = vpack.c.bf16 %v481_v4, %v481_v4 }
 0x438   :  { %v1125_v8 = vpop.f32.mrf.mxu0 }
 0x439   :  { %v491_v9 = vsel %vm138_vm1, %v488_v5, 0 }
 0x43a   :  { %v484_v10 = vpop.f32.mrf.mxu0  ;;  %1128 = vmatpush3.bf16.msra.mxu1 %v491_v9 }
 0x43b   :  { %v489_v13 = vpack.c.bf16 %v484_v10, %v484_v10  ;;  %1139 = vmatprep.subr.bf16.mxu1 %v1357_v0 }
 0x43c   :  { %v1126_v16 = vpop.f32.mrf.mxu0 }
 0x43d   :  { %v534_v17 = vsel %vm138_vm1, %v489_v13, 0  ;;  %1130 = vmatmul.mubr.msk.bf16.vlgmr.msra.gmra.mxu1 %vm134_vm2, %v1477_v12 }
 0x43e   :  { %1134 = vmatpush3.bf16.msra.mxu0 %v534_v17  ;;  %1140 = vmatpush3.bf16.msra.mxu1 %v589_v11 }
 0x43f   :  { %1141 = vmatprep.subr.bf16.mxu1 %v1357_v0  ;;  %1143 = vmatprep.mubr.msk.bf16.mxu1 %vm1358_vm0, %v1357_v0 }
 0x440   :  { %1147 = vmatprep.subr.bf16.mxu0 %v1357_v0 }
 0x441   :  { %1136 = vmatmul.mubr.msk.bf16.vlgmr.msra.gmra.mxu0 %vm134_vm2, %v1486_v18 }
 0x442   :  { %1142 = vmatpush3.bf16.msra.mxu1 %v588_v19  ;;  %1149 = vmatprep.mubr.msk.bf16.mxu0 %vm1358_vm0, %v1357_v0 }
 0x443   :  { %1153 = vmatprep.subr.bf16.mxu1 %v1357_v0 }
 0x445   :  { %1144 = vmatmul.mubr.msk.bf16.vlgmr.msra.gmra.mxu1 %vm294_vm3, %v441_v2  ;;  %v797_v2 = vld [vmem:[%s1662_s12 + $0x8] sm:$0xff]  ;;  %s1359_s12 = smov 16  }
 0x446   :  { %1155 = vmatprep.mubr.msk.bf16.mxu1 %vm1358_vm0, %v1357_v0  ;;  %v799_v3 = vpack.c.bf16 %v797_v2, %v796_v1 }
 0x4fd   :  { %v527_v20 = vpop.f32.mrf.mxu1 }
 0x4fe   :  { %v1601_v58 = vadd.f32 %v1036_v54, %v527_v20 }
 0x4ff   :  { %v1131_v21 = vpop.f32.mrf.mxu1 }
 0x501   :  { %v530_v22 = vpop.f32.mrf.mxu1  ;;  %v570_v23 = vpop.f32.mrf.mxu0 }
 0x502   :  { %v1603_v59 = vadd.f32 %v1036_v54, %v570_v23 }
 0x503   :  { %v1132_v24 = vpop.f32.mrf.mxu1  ;;  %v1137_v25 = vpop.f32.mrf.mxu0 }
 0x504   :  { %v1042_v25 = vld [vmem:[#allocation10] ss:$0 sm:$0xff] }
 0x505   :  { %v624_v26 = vpop.f32.mrf.mxu1  ;;  %v573_v27 = vpop.f32.mrf.mxu0 }
 0x506   :  { %v631_v28 = vpack.c.bf16 %v624_v26, %v624_v26 }
 0x507   :  { %v1145_v29 = vpop.f32.mrf.mxu1  ;;  %v1138_v30 = vpop.f32.mrf.mxu0 }
 0x508   :  { %v634_v31 = vsel %vm138_vm1, %v631_v28, 0 }
 0x509   :  { %v627_v32 = vpop.f32.mrf.mxu1  ;;  %1148 = vmatpush3.bf16.msra.mxu0 %v634_v31 }
 0x50a   :  { %v632_v33 = vpack.c.bf16 %v627_v32, %v627_v32  ;;  %1159 = vmatprep.subr.bf16.mxu0 %v1357_v0 }
 0x50b   :  { %v1146_v34 = vpop.f32.mrf.mxu1 }
 0x50c   :  { %v677_v35 = vsel %vm138_vm1, %v632_v33, 0  ;;  %1150 = vmatmul.mubr.msk.bf16.vlgmr.msra.gmra.mxu0 %vm134_vm2, %v1477_v12  ;;  %v738_v12 = vld [vmem:[%s1661_s11 + $0x8] sm:$0xff] }
 0x50d   :  { %1154 = vmatpush3.bf16.msra.mxu1 %v677_v35  ;;  %1161 = vmatprep.mubr.msk.bf16.mxu0 %vm1358_vm0, %v1357_v0  ;;  %v740_v37 = vpack.c.bf16 %v738_v12, %v737_v36 }
 0x50e   :  { %1165 = vmatprep.subr.bf16.mxu1 %v1357_v0 }
 0x50f   :  { %1160 = vmatpush3.bf16.msra.mxu0 %v740_v37 }
 0x510   :  { %1156 = vmatmul.mubr.msk.bf16.vlgmr.msra.gmra.mxu1 %vm134_vm2, %v1486_v18  ;;  %1171 = vmatprep.subr.bf16.mxu0 %v1357_v0 }
 0x511   :  { %1167 = vmatprep.mubr.msk.bf16.mxu1 %vm1358_vm0, %v1357_v0  ;;  %1166 = vmatpush3.bf16.msra.mxu1 %v799_v3 }
 0x512   :  { %1177 = vmatprep.subr.bf16.mxu1 %v1357_v0 }
 0x5cc   :  { %v670_v39 = vpop.f32.mrf.mxu0 }
 0x5cd   :  { %v1589_v40 = vadd.f32 %v1040_v38, %v670_v39 }
 0x5ce   :  { %v1151_v18 = vpop.f32.mrf.mxu0 }
 0x5cf   :  { %v727_v41 = vmul.f32 0.5, %v1589_v40 }
 0x5d0   :  { %v713_v42 = vpop.f32.mrf.mxu1  ;;  %v673_v43 = vpop.f32.mrf.mxu0 }
 0x5d1   :  { %v729_v44 = vmul.f32 1.442695, %v727_v41  ;;  %v1592_v45 = vadd.f32 %v1040_v38, %v713_v42 }
 0x5d2   :  { %v1157_v46 = vpop.f32.mrf.mxu1  ;;  %v1152_v47 = vpop.f32.mrf.mxu0 }
 0x5d3   :  { %1195 = vpow2.f32 %v729_v44  ;;  %v728_v48 = vmul.f32 0.5, %v1592_v45 }
 0x5d4   :  { %v716_v49 = vpop.f32.mrf.mxu1 }
 0x5d5   :  { %v731_v50 = vmul.f32 1.442695, %v728_v48 }
 0x5d6   :  { %v1158_v51 = vpop.f32.mrf.mxu1 }
 0x5d7   :  { %1197 = vpow2.f32 %v731_v50 }
 0x5e0   :  { %v1196_v52 = vpop.eup %1195 }
 0x5e1   :  { %v733_v56 = vmul.f32 %v1196_v52, %v120_v53 }
 0x5e3   :  { %v1606_v61 = vadd.f32 %v733_v56, %v1601_v58 }
 0x5e4   :  { %v1198_v57 = vpop.eup %1197 }
 0x5e5   :  { %v734_v60 = vmul.f32 %v1198_v57, %v121_v55 }
 0x5e7   :  { %v1609_v62 = vadd.f32 %v734_v60, %v1603_v59 }
 0x5e9   :  { %v739_v63 = vpack.c.bf16 %v1609_v62, %v1606_v61 }
 0x5eb   :  { %1162 = vmatmul.mubr.msk.bf16.vlgmr.msra.gmra.mxu0 %vm741_vm4, %v739_v63 }
 0x5ec   :  { %1173 = vmatprep.mubr.msk.bf16.mxu0 %vm1358_vm0, %v1357_v0 }
 0x6ab   :  { %v779_v4 = vpop.f32.mrf.mxu0 }
 0x6ac   :  { %v786_v5 = vsub.f32 0.0, %v779_v4 }
 0x6ad   :  { %v1163_v6 = vpop.f32.mrf.mxu0 }
 0x6ae   :  { %v788_v7 = vmul.f32 1.442695, %v786_v5 }
 0x6af   :  { %v782_v8 = vpop.f32.mrf.mxu0 }
 0x6b0   :  { %1199 = vpow2.f32 %v788_v7  ;;  %v787_v9 = vsub.f32 0.0, %v782_v8 }
 0x6b1   :  { %v1164_v10 = vpop.f32.mrf.mxu0 }
 0x6b2   :  { %v790_v11 = vmul.f32 1.442695, %v787_v9 }
 0x6b4   :  { %1201 = vpow2.f32 %v790_v11 }
 0x6bd   :  { %v1200_v13 = vpop.eup %1199 }
 0x6be   :  { %v792_v14 = vadd.f32 1.0, %v1200_v13 }
 0x6c0   :  { %1203 = vrcp.f32 %v792_v14 }
 0x6c1   :  { %v1202_v15 = vpop.eup %1201 }
 0x6c2   :  { %v793_v16 = vadd.f32 1.0, %v1202_v15 }
 0x6c4   :  { %1205 = vrcp.f32 %v793_v16 }
 0x6cd   :  { %v1204_v17 = vpop.eup %1203 }
 0x6ce   :  { %v872_v19 = vpack.c.bf16 %v1204_v17, %v1204_v17 }
 0x6d0   :  { %v875_v20 = vsel %vm741_vm4, %v872_v19, 0 }
 0x6d1   :  { %v1206_v21 = vpop.eup %1205  ;;  %1172 = vmatpush3.bf16.xpose.msra.mxu0 %v875_v20 }
 0x6d2   :  { %v798_v22 = vpack.c.bf16 %v1206_v21, %v1204_v17  ;;  %v873_v23 = vpack.c.bf16 %v1206_v21, %v1206_v21 }
 0x6d4   :  { %1168 = vmatmul.mubr.msk.bf16.vlgmr.msra.gmra.mxu1 %vm741_vm4, %v798_v22  ;;  %v918_v24 = vsel %vm741_vm4, %v873_v23, 0 }
 0x6d5   :  { %1178 = vmatpush3.bf16.xpose.msra.mxu1 %v918_v24  ;;  %1179 = vmatprep.mubr.msk.bf16.mxu1 %vm1358_vm0, %v1357_v0 }
 0x6d8   :  { %1174 = vmatmul.mubr.msk.bf16.vlgmr.msra.gmra.mxu0 %vm741_vm4, %v872_v19 }
 0x6dc   :  { %1180 = vmatmul.mubr.msk.bf16.vlgmr.msra.gmra.mxu1 %vm741_vm4, %v873_v23 }
 0x794   :  { %v843_v26 = vpop.f32.mrf.mxu1 }
 0x795   :  { %v844_v27 = vadd.f32 %v1042_v25, %v843_v26 }
 0x796   :  { %v1169_v28 = vpop.f32.mrf.mxu1 }
 0x797   :  { %v850_v29 = vsel %vm134_vm2, %v844_v27, -inf }
 0x798   :  { %851 = vmax.xlane.f32.xlu0 %v850_v29  ;;  %v846_v30 = vpop.f32.mrf.mxu1  ;;  %v911_v31 = vpop.f32.mrf.mxu0 }
 0x799   :  { %v847_v32 = vadd.f32 %v1042_v25, %v846_v30 }
 0x79a   :  { %v1170_v33 = vpop.f32.mrf.mxu1  ;;  %v1175_v34 = vpop.f32.mrf.mxu0 }
 0x79b   :  { %v853_v35 = vsel %vm134_vm2, %v847_v32, -inf }
 0x79c   :  { %854 = vmax.xlane.f32.xlu0 %v853_v35  ;;  %v914_v0 = vpop.f32.mrf.mxu0  ;;  %v954_v36 = vpop.f32.mrf.mxu1 }
 0x79d   :  { %v961_v52 = vsub.f32 0.0, %v954_v36 }
 0x79e   :  { %v1176_v12 = vpop.f32.mrf.mxu0  ;;  %v1181_v37 = vpop.f32.mrf.mxu1 }
 0x79f   :  { %v964_v53 = vmul.f32 1.442695, %v961_v52 }
 0x7a0   :  { %v957_v38 = vpop.f32.mrf.mxu1 }
 0x7a2   :  { %v1182_v39 = vpop.f32.mrf.mxu1 }
 0x7b2   :  { %972 = vrot.lane.b32.xlu0 %v1589_v40, %s1359_s12  ;;  %v960_v40 = vsub.f32 0.0, %v911_v31 }
 0x7b4   :  { %v962_v51 = vmul.f32 1.442695, %v960_v40 }
 0x821   :  { %v852_v18 = vpop.xlane.xlu0 %851 }
 0x822   :  { %v856_v41 = vsub.f32 %v844_v27, %v852_v18 }
 0x824   :  { %v858_v42 = vmul.f32 1.442695, %v856_v41 }
 0x825   :  { %v855_v43 = vpop.xlane.xlu0 %854 }
 0x826   :  { %1207 = vpow2.f32 %v858_v42  ;;  %v857_v44 = vsub.f32 %v847_v32, %v855_v43 }
 0x828   :  { %v860_v46 = vmul.f32 1.442695, %v857_v44 }
 0x829   :  { %v973_v6 = vpop.permute.xlu0 %972 }
 0x82a   :  { %1209 = vpow2.f32 %v860_v46  ;;  %v1002_v9 = vsel %vm741_vm4, %v1601_v58, %v973_v6 }
 0x82b   :  { %1211 = vpow2.f32 %v962_v51 }
 0x82c   :  { %1213 = vpow2.f32 %v964_v53 }
 0x833   :  { %v1208_v47 = vpop.eup %1207 }
 0x834   :  { %v862_v48 = vsel %vm134_vm2, %v1208_v47, 0.0 }
 0x835   :  { %863 = vadd.xlane.f32.xlu1 %v862_v48 }
 0x837   :  { %v1210_v49 = vpop.eup %1209 }
 0x838   :  { %v865_v50 = vsel %vm134_vm2, %v1210_v49, 0.0  ;;  %v1212_v54 = vpop.eup %1211 }
 0x839   :  { %866 = vadd.xlane.f32.xlu1 %v865_v50  ;;  %v966_v56 = vadd.f32 1.0, %v1212_v54  ;;  %v1214_v57 = vpop.eup %1213 }
 0x84a   :  { %974 = vrot.lane.b32.xlu1 %v1592_v45, %s1359_s12  ;;  %v967_v45 = vadd.f32 1.0, %v1214_v57 }
 0x84e   :  { %980 = vrot.lane.b32.xlu1 %v1606_v61, %s1360_s21 }
 0x852   :  { %982 = vrot.lane.b32.xlu1 %v1609_v62, %s1360_s21 }
 0x8be   :  { %v864_v55 = vpop.xlane.xlu1 %863 }
 0x8bf   :  { %1215 = vrcp.f32 %v864_v55 }
 0x8c2   :  { %v867_v60 = vpop.xlane.xlu1 %866 }
 0x8c3   :  { %1217 = vrcp.f32 %v867_v60 }
 0x8c4   :  { %1219 = vrcp.f32 %v966_v56 }
 0x8c5   :  { %1221 = vrcp.f32 %v967_v45 }
 0x8c6   :  { %v975_v4 = vpop.permute.xlu1 %974 }
 0x8c7   :  { %v1003_v16 = vsel %vm741_vm4, %v1603_v59, %v975_v4 }
 0x8ca   :  { %v981_v5 = vpop.permute.xlu1 %980 }
 0x8cb   :  { %v1004_v10 = vsel %vm294_vm3, %v1002_v9, %v981_v5 }
 0x8cc   :  { %v1216_v63 = vpop.eup %1215 }
 0x8cd   :  { %v870_v61 = vmul.f32 %v1216_v63, %v1208_v47 }
 0x8ce   :  { %v983_v7 = vpop.permute.xlu1 %982 }
 0x8cf   :  { %988 = vrot.lane.b32.xlu0 %v870_v61, %s1361_s5  ;;  %v1005_v19 = vsel %vm294_vm3, %v1003_v16, %v983_v7 }
 0x8d0   :  { %v1218_v62 = vpop.eup %1217 }
 0x8d1   :  { %v871_v1 = vmul.f32 %v1218_v62, %v1210_v49  ;;  %v1220_v2 = vpop.eup %1219 }
 0x8d2   :  { %v1222_v3 = vpop.eup %1221 }
 0x8d3   :  { %990 = vrot.lane.b32.xlu1 %v871_v1, %s1361_s5  ;;  %996 = vrot.lane.b32.xlu0 %v1220_v2, %s1362_s22 }
 0x8d7   :  { %998 = vrot.lane.b32.xlu1 %v1222_v3, %s1362_s22 }
 0x941   :  { %v989_v8 = vpop.permute.xlu0 %988 }
 0x942   :  { %v1007_v11 = vsel %vm1006_vm5, %v1004_v10, %v989_v8 }
 0x945   :  { %v991_v13 = vpop.permute.xlu1 %990  ;;  %v997_v14 = vpop.permute.xlu0 %996 }
 0x946   :  { %v1010_v15 = vsel %vm1009_vm6, %v1007_v11, %v997_v14  ;;  %v1008_v20 = vsel %vm1006_vm5, %v1005_v19, %v991_v13 }
 0x947   :  { %v1013_v17 = vsel %vm1012_vm7, %v1010_v15, 0.0 }
 0x948   :  { %1015 = vst [vmem:[%s1664_s14] sm:$0xff] %v1013_v17 }
 0x949   :  { %v999_v58 = vpop.permute.xlu1 %998 }
 0x94a   :  { %v1011_v21 = vsel %vm1009_vm6, %v1008_v20, %v999_v58 }
 0x94b   :  { %v1014_v22 = vsel %vm1012_vm7, %v1011_v21, 0.0 }
 0x94c   :  { %1016 = vst [vmem:[%s1664_s14 + $0x8] sm:$0xff] %v1014_v22 }
 0x94d   :  { %1021 = vsyncpa [#allocation3], 1 }
 0x94e   :  { %1022 = vsyncpa [#allocation5], 1 }
 0x94f   :  { %1023 = vsyncpa [#allocation8], 1 }
 0x950   :  { %1024 = vsyncpa [#allocation11], 1 }

</bundles_post_ra>
